<compile_context>
chip_gen: v7x
topology: tpu7x:2x2x1
jax: 0.10.0
libtpu: 0.0.40
codegen_flags: <defaults>
</compile_context>

<pallas_src>
import jax
import jax.numpy as jnp
from jax.experimental import pallas as pl
from jax.experimental.pallas import tpu as pltpu


def _round_up(x, m):
    return (x + m - 1) // m * m


def _pick_tile(total, target):
    """Largest multiple of 128 <= target that divides `total` (total % 128 == 0)."""
    t = max(128, (min(target, total) // 128) * 128)
    while total % t:
        t -= 128
    return t


# ------------- Kernel 1: H = X @ W^T  (row-tiled pure matmul, W^T resident) -------------
def linear_kernel(x_ref, wt_ref, h_ref):
    h_ref[...] = jnp.dot(
        x_ref[...], wt_ref[...], preferred_element_type=jnp.float32
    ).astype(h_ref.dtype)


# ------------- Kernel 2: Out = A_norm @ H + bias  ((dst, src) tiled) --------------------
# Output block (dst tile, f32) is revisited across the trailing src ("arbitrary") axis,
# so it stays VMEM-resident and we accumulate into it directly; bias is added at k == 0.
def aggregate_kernel(a_ref, h_ref, b_ref, out_ref):
    k = pl.program_id(1)
    tile_src = a_ref.shape[1]

    if h_ref.shape[0] == tile_src:
        # H block streamed per src step (fallback path / single src tile)
        h_blk = h_ref[...]
    else:
        # H fully VMEM-resident (constant index_map) -> slice the current src chunk
        start = pl.multiple_of(k * tile_src, tile_src)
        h_blk = h_ref[pl.ds(start, tile_src), :]

    acc = jnp.dot(a_ref[...], h_blk, preferred_element_type=jnp.float32)

    @pl.when(k == 0)
    def _():
        out_ref[...] = acc + b_ref[...]

    @pl.when(k > 0)
    def _():
        out_ref[...] += acc


def gcn_forward(x, edge_index, edge_attr, weight, bias):
    """GCNConv forward.

    x:          [N, Cin] float32 node features
    edge_index: [2, E]   int32   (row 0 = src, row 1 = dst)
    edge_attr:  [E]      float32 edge weights (or None -> ones)
    weight:     [Cout, Cin]
    bias:       [Cout]
    """
    n, cin = x.shape
    cout = weight.shape[0]
    e = edge_index.shape[1]

    if edge_attr is None:
        edge_attr = jnp.ones((e,), jnp.float32)
    edge_attr = edge_attr.astype(jnp.float32)

    # ---- glue: dense A_hat with PyG add_remaining_self_loops semantics ----
    src, dst = edge_index[0], edge_index[1]
    is_loop = src == dst
    a_hat = jnp.zeros((n, n), jnp.float32).at[dst, src].add(edge_attr)
    has_loop = jnp.zeros((n,), bool).at[jnp.where(is_loop, src, n)].set(True, mode="drop")
    diag = jnp.arange(n)
    a_hat = a_hat.at[diag, diag].add(jnp.where(has_loop, 0.0, 1.0))

    # ---- symmetric normalization folded into A in f32 (before any bf16 cast) ----
    deg = jnp.sum(a_hat, axis=1)
    d = jnp.where(deg > 0.0, jax.lax.rsqrt(deg), 0.0)
    a_norm = d[:, None] * a_hat * d[None, :]

    # ---- pad to MXU/lane-friendly shapes; pick tiles ----
    n_pad = _round_up(max(n, 128), 128)
    cout_pad = _round_up(max(cout, 128), 128)

    # dst tile targets 256 but keeps >= 2 grid steps on the "parallel" axis when possible
    dst_target = 256 if n_pad >= 512 else max(128, n_pad // 2)
    tile_dst = _pick_tile(n_pad, dst_target)
    tile_src = _pick_tile(n_pad, 512)
    tile_row = _pick_tile(n_pad, 512)          # kernel-1 row tile

    vmem_limit = 48 * 1024 * 1024              # safe on v7x (64 MiB physical VMEM)
    h_resident = (n_pad * cout_pad * 2) <= 24 * 1024 * 1024

    x_p = jnp.zeros((n_pad, cin), jnp.bfloat16).at[:n, :].set(x.astype(jnp.bfloat16))
    a_p = jnp.zeros((n_pad, n_pad), jnp.bfloat16).at[:n, :n].set(a_norm.astype(jnp.bfloat16))
    wt_p = jnp.zeros((cin, cout_pad), jnp.bfloat16).at[:, :cout].set(
        weight.T.astype(jnp.bfloat16))
    b_p = jnp.zeros((1, cout_pad), jnp.float32).at[0, :cout].set(bias.astype(jnp.float32))

    # ---- kernel 1: H = X @ W^T, computed once ----
    h = pl.pallas_call(
        linear_kernel,
        out_shape=jax.ShapeDtypeStruct((n_pad, cout_pad), jnp.bfloat16),
        grid_spec=pltpu.PrefetchScalarGridSpec(
            num_scalar_prefetch=0,
            grid=(n_pad // tile_row,),
            in_specs=[
                pl.BlockSpec((tile_row, cin), lambda i: (i, 0)),      # X row tile
                pl.BlockSpec((cin, cout_pad), lambda i: (0, 0)),      # W^T (resident)
            ],
            out_specs=pl.BlockSpec((tile_row, cout_pad), lambda i: (i, 0)),
        ),
        compiler_params=pltpu.CompilerParams(
            dimension_semantics=("parallel",),
            vmem_limit_bytes=vmem_limit,
        ),
    )(x_p, wt_p)

    # ---- kernel 2: Out = A_norm @ H + bias ----
    if h_resident:
        h_spec = pl.BlockSpec((n_pad, cout_pad), lambda i, k: (0, 0))   # fetched once
    else:
        h_spec = pl.BlockSpec((tile_src, cout_pad), lambda i, k: (k, 0))

    out = pl.pallas_call(
        aggregate_kernel,
        out_shape=jax.ShapeDtypeStruct((n_pad, cout_pad), jnp.float32),
        grid_spec=pltpu.PrefetchScalarGridSpec(
            num_scalar_prefetch=0,
            grid=(n_pad // tile_dst, n_pad // tile_src),
            in_specs=[
                pl.BlockSpec((tile_dst, tile_src), lambda i, k: (i, k)),   # A_norm tile
                h_spec,                                                    # H
                pl.BlockSpec((1, cout_pad), lambda i, k: (0, 0)),          # bias
            ],
            out_specs=pl.BlockSpec((tile_dst, cout_pad), lambda i, k: (i, 0)),
        ),
        compiler_params=pltpu.CompilerParams(
            dimension_semantics=("parallel", "arbitrary"),
            vmem_limit_bytes=vmem_limit,
        ),
    )(a_p, h, b_p)

    return out[:n, :cout]


if __name__ == "__main__":
    key = jax.random.PRNGKey(0)
    k_x, k_w, k_e, k_a = jax.random.split(key, 4)

    N, CIN, COUT, E = 16, 16, 32, 48

    x = jax.random.normal(k_x, (N, CIN), jnp.float32)

    # Glorot-style weight init (matches GCNConv.reset_parameters), zero bias.
    limit = (6.0 / (CIN + COUT)) ** 0.5
    weight = jax.random.uniform(k_w, (COUT, CIN), jnp.float32, -limit, limit)
    bias = jnp.zeros((COUT,), jnp.float32)

    edge_index = jax.random.randint(k_e, (2, E), 0, N, dtype=jnp.int32)
    edge_attr = jax.random.uniform(k_a, (E,), jnp.float32, 0.5, 1.5)

    gcn = jax.jit(gcn_forward)
    out = gcn(x, edge_index, edge_attr, weight, bias)
    jax.block_until_ready(out)

    # ---- pure-JAX f32 reference (same add_remaining_self_loops semantics) ----
    src, dst = edge_index[0], edge_index[1]
    is_loop = src == dst
    a = jnp.zeros((N, N), jnp.float32).at[dst, src].add(edge_attr)
    has_loop = jnp.zeros((N,), bool).at[jnp.where(is_loop, src, N)].set(True, mode="drop")
    a = a.at[jnp.arange(N), jnp.arange(N)].add(jnp.where(has_loop, 0.0, 1.0))
    deg = a.sum(-1)
    d = jnp.where(deg > 0, deg ** -0.5, 0.0)
    ref = (d[:, None] * a * d[None, :]) @ (x @ weight.T) + bias[None, :]

    # bf16 MXU operands -> loosened tolerance vs the f32 reference.
    assert out.shape == (N, COUT)
    assert jnp.allclose(out, ref, atol=5e-2, rtol=5e-2), float(jnp.max(jnp.abs(out - ref)))

    print("KERNEL_OK")
</pallas_src>

<mosaic_0001>
module attributes {stable_mosaic.version = 11 : i64} {
  func.func private @main(%arg0: i32) attributes {dimension_semantics = [#tpu.dimension_semantics<core_parallel>], iteration_bounds = array<i64: 2>, tpu.core_type = #tpu.core_type<sc_scalar_subcore>, window_params = []} {
    return
  }
}

module attributes {stable_mosaic.version = 11 : i64} {
  func.func private @main(%arg0: i32) attributes {dimension_semantics = [#tpu.dimension_semantics<core_parallel>], iteration_bounds = array<i64: 2>, tpu.core_type = #tpu.core_type<sc_scalar_subcore>, window_params = []} {
    return
  }
}

module attributes {stable_mosaic.version = 11 : i64} {
  func.func @linear_kernel(%arg0: i32, %arg1: memref<128x16xbf16, #tpu.memory_space<vmem>>, %arg2: memref<16x128xbf16, #tpu.memory_space<vmem>>, %arg3: memref<128x128xbf16, #tpu.memory_space<vmem>>) attributes {dimension_semantics = [#tpu.dimension_semantics<parallel>], iteration_bounds = array<i64: 1>, scalar_prefetch = 0 : i64, scratch_operands = 0 : i64, tpu.core_type = #tpu.core_type<tc>, window_params = [{transform_indices = @transform_0, window_bounds = array<i64: 128, 16>}, {pipeline_mode = #tpu.pipeline_mode<synchronous>, transform_indices = @transform_1, window_bounds = array<i64: 16, 128>}, {transform_indices = @transform_2, window_bounds = array<i64: 128, 128>}]} {
    %c0 = arith.constant 0 : index
    %c0_0 = arith.constant 0 : index
    %0 = vector.load %arg1[%c0, %c0_0] : memref<128x16xbf16, #tpu.memory_space<vmem>>, vector<128x16xbf16>
    %c0_1 = arith.constant 0 : index
    %c0_2 = arith.constant 0 : index
    %1 = vector.load %arg2[%c0_1, %c0_2] : memref<16x128xbf16, #tpu.memory_space<vmem>>, vector<16x128xbf16>
    %cst = arith.constant dense<0.000000e+00> : vector<128x128xf32>
    %2 = tpu.matmul %0, %1, %cst {dimension_numbers = #tpu.dot_dimension_numbers<[1], [0], [0], [1], [0, 0, 1, 1], [], []>} : vector<128x16xbf16>, vector<16x128xbf16>, vector<128x128xf32> -> vector<128x128xf32>
    %3 = arith.truncf %2 : vector<128x128xf32> to vector<128x128xbf16>
    %c0_3 = arith.constant 0 : index
    %c0_4 = arith.constant 0 : index
    %4 = vector.load %arg3[%c0_3, %c0_4] : memref<128x128xbf16, #tpu.memory_space<vmem>>, vector<128x128xbf16>
    tpu.vector_store %arg3[%c0_3, %c0_4], %3 {strides = array<i32>} : memref<128x128xbf16, #tpu.memory_space<vmem>>, vector<128x128xbf16>,
    return
  }
  func.func @transform_0(%arg0: i32) -> (i32, i32) {
    %c0_i32 = arith.constant 0 : i32
    %c0_i32_0 = arith.constant 0 : i32
    return %arg0, %c0_i32 : i32, i32
  }
  func.func @transform_1(%arg0: i32) -> (i32, i32) {
    %c0_i32 = arith.constant 0 : i32
    %c0_i32_0 = arith.constant 0 : i32
    %c0_i32_1 = arith.constant 0 : i32
    return %c0_i32, %c0_i32_0 : i32, i32
  }
  func.func @transform_2(%arg0: i32) -> (i32, i32) {
    %c0_i32 = arith.constant 0 : i32
    %c0_i32_0 = arith.constant 0 : i32
    return %arg0, %c0_i32 : i32, i32
  }
}

module attributes {stable_mosaic.version = 11 : i64} {
  func.func @aggregate_kernel(%arg0: i32, %arg1: i32, %arg2: memref<128x128xbf16, #tpu.memory_space<vmem>>, %arg3: memref<128x128xbf16, #tpu.memory_space<vmem>>, %arg4: memref<1x128xf32, #tpu.memory_space<vmem>>, %arg5: memref<128x128xf32, #tpu.memory_space<vmem>>) attributes {dimension_semantics = [#tpu.dimension_semantics<parallel>, #tpu.dimension_semantics<arbitrary>], iteration_bounds = array<i64: 1, 1>, scalar_prefetch = 0 : i64, scratch_operands = 0 : i64, tpu.core_type = #tpu.core_type<tc>, window_params = [{transform_indices = @transform_0, window_bounds = array<i64: 128, 128>}, {pipeline_mode = #tpu.pipeline_mode<synchronous>, transform_indices = @transform_1, window_bounds = array<i64: 128, 128>}, {pipeline_mode = #tpu.pipeline_mode<synchronous>, transform_indices = @transform_2, window_bounds = array<i64: 1, 128>}, {transform_indices = @transform_3, window_bounds = array<i64: 128, 128>}]} {
    %c0 = arith.constant 0 : index
    %c0_0 = arith.constant 0 : index
    %0 = vector.load %arg3[%c0, %c0_0] : memref<128x128xbf16, #tpu.memory_space<vmem>>, vector<128x128xbf16>
    %c0_1 = arith.constant 0 : index
    %c0_2 = arith.constant 0 : index
    %1 = vector.load %arg2[%c0_1, %c0_2] : memref<128x128xbf16, #tpu.memory_space<vmem>>, vector<128x128xbf16>
    %cst = arith.constant dense<0.000000e+00> : vector<128x128xf32>
    %2 = tpu.matmul %1, %0, %cst {dimension_numbers = #tpu.dot_dimension_numbers<[1], [0], [0], [1], [0, 0, 1, 1], [], []>} : vector<128x128xbf16>, vector<128x128xbf16>, vector<128x128xf32> -> vector<128x128xf32>
    %c0_i32 = arith.constant 0 : i32
    %3 = arith.cmpi eq, %arg1, %c0_i32 : i32
    %4 = arith.extui %3 : i1 to i32
    %c0_i32_3 = arith.constant 0 : i32
    %5 = arith.cmpi ne, %4, %c0_i32_3 : i32
    scf.if %5 {
      %c0_6 = arith.constant 0 : index
      %c0_7 = arith.constant 0 : index
      %9 = vector.load %arg4[%c0_6, %c0_7] : memref<1x128xf32, #tpu.memory_space<vmem>>, vector<1x128xf32>
      %10 = vector.broadcast %9 : vector<1x128xf32> to vector<128x128xf32>
      %11 = arith.addf %2, %10 : vector<128x128xf32>
      %c0_8 = arith.constant 0 : index
      %c0_9 = arith.constant 0 : index
      %12 = vector.load %arg5[%c0_8, %c0_9] : memref<128x128xf32, #tpu.memory_space<vmem>>, vector<128x128xf32>
      tpu.vector_store %arg5[%c0_8, %c0_9], %11 {strides = array<i32>} : memref<128x128xf32, #tpu.memory_space<vmem>>, vector<128x128xf32>,
    } else {
    }
    %c0_i32_4 = arith.constant 0 : i32
    %6 = arith.cmpi sgt, %arg1, %c0_i32_4 : i32
    %7 = arith.extui %6 : i1 to i32
    %c0_i32_5 = arith.constant 0 : i32
    %8 = arith.cmpi ne, %7, %c0_i32_5 : i32
    scf.if %8 {
      %c0_6 = arith.constant 0 : index
      %c0_7 = arith.constant 0 : index
      %9 = vector.load %arg5[%c0_6, %c0_7] : memref<128x128xf32, #tpu.memory_space<vmem>>, vector<128x128xf32>
      %10 = arith.addf %9, %2 : vector<128x128xf32>
      %c0_8 = arith.constant 0 : index
      %c0_9 = arith.constant 0 : index
      %11 = vector.load %arg5[%c0_8, %c0_9] : memref<128x128xf32, #tpu.memory_space<vmem>>, vector<128x128xf32>
      tpu.vector_store %arg5[%c0_8, %c0_9], %10 {strides = array<i32>} : memref<128x128xf32, #tpu.memory_space<vmem>>, vector<128x128xf32>,
    } else {
    }
    return
  }
  func.func @transform_0(%arg0: i32, %arg1: i32) -> (i32, i32) {
    %c0_i32 = arith.constant 0 : i32
    return %arg0, %arg1 : i32, i32
  }
  func.func @transform_1(%arg0: i32, %arg1: i32) -> (i32, i32) {
    %c0_i32 = arith.constant 0 : i32
    %c0_i32_0 = arith.constant 0 : i32
    %c0_i32_1 = arith.constant 0 : i32
    return %c0_i32, %c0_i32_0 : i32, i32
  }
  func.func @transform_2(%arg0: i32, %arg1: i32) -> (i32, i32) {
    %c0_i32 = arith.constant 0 : i32
    %c0_i32_0 = arith.constant 0 : i32
    %c0_i32_1 = arith.constant 0 : i32
    return %c0_i32, %c0_i32_0 : i32, i32
  }
  func.func @transform_3(%arg0: i32, %arg1: i32) -> (i32, i32) {
    %c0_i32 = arith.constant 0 : i32
    %c0_i32_0 = arith.constant 0 : i32
    return %arg0, %c0_i32 : i32, i32
  }
}

</mosaic_0001>

<bundles_post_ra>
// kernel: gcn_forward.2
= control target key start
LH: loop header
LB: loop body
LE: loop exit
PB: predicated region body
PF: predicated region fallthrough
CT: control target
= control target key end

     0   :  { %vm76_vm0 = vcmask 130048   ;;  %s490_s1 = inlined_call_operand.vmem [shape: bf16[16,128], index: 1, kind: input, shape index: {}]   ;;  %s491_s0 = inlined_call_operand.vmem [shape: bf16[128,16], index: 0, kind: input, shape index: {}]   ;;  %s492_s2 = inlined_call_operand.vmem [shape: bf16[128,128], index: 2, kind: output, shape index: {}]  }
   0x1   :  { %v407_v0 = vld [vmem:[%s490_s1] sm:$0xff]   ;;  %v410_v3 = vld [vmem:[%s491_s0 + $0x8] sm:$0xff]   ;;  %v412_v5 = vld [vmem:[%s491_s0 + $0x10] sm:$0xff]  }
   0x2   :  { %v408_v1 = vld [vmem:[%s491_s0] sm:$0xff]   ;;  %387 = vmatprep.subr.bf16.mxu0 %v407_v0  ;;  %405 = vmatprep.subr.bf16.mxu1 %v407_v0  ;;  %v411_v4 = vld [vmem:[%s491_s0 + $0x28] sm:$0xff]   ;;  %v413_v6 = vld [vmem:[%s491_s0 + $0x30] sm:$0xff]  }
   0x3   :  { %v409_v2 = vld [vmem:[%s491_s0 + $0x20] sm:$0xff]   ;;  %388 = vmatpush3.bf16.msra.mxu0 %v407_v0  ;;  %406 = vmatpush3.bf16.msra.mxu1 %v407_v0  ;;  %v414_v7 = vld [vmem:[%s491_s0 + $0x18] sm:$0xff]  }
   0x4   :  { %389 = vmatprep.mubr.msk.bf16.mxu0 %vm76_vm0, %v408_v1  ;;  %397 = vmatprep.mubr.msk.bf16.mxu1 %vm76_vm0, %v409_v2  ;;  %v415_v8 = vld [vmem:[%s491_s0 + $0x38] sm:$0xff]  }
   0x6   :  { %390 = vmatmul.mubr.msk.bf16.vlgmr.msra.gmra.mrb[0].mxu0 %vm76_vm0, %v410_v3  ;;  %398 = vmatmul.mubr.msk.bf16.vlgmr.msra.gmra.mrb[0].mxu1 %vm76_vm0, %v411_v4 }
   0x7   :  { %393 = vmatprep.mubr.msk.bf16.mxu0 %vm76_vm0, %v412_v5  ;;  %401 = vmatprep.mubr.msk.bf16.mxu1 %vm76_vm0, %v413_v6 }
   0xe   :  { %394 = vmatmul.mubr.msk.bf16.gmra.mrb[4].mxu0 %vm76_vm0, %v414_v7  ;;  %402 = vmatmul.mubr.msk.bf16.gmra.mrb[4].mxu1 %vm76_vm0, %v415_v8 }
  0xd9   :  { %v391_v9 = vpop.f32.mrb[0].mxu0  ;;  %v399_v10 = vpop.f32.mrb[0].mxu1 }
  0xda   :  { %v135_v11 = vpop.f32.mrb[1].mxu0  ;;  %v167_v12 = vpop.f32.mrb[1].mxu1 }
  0xdb   :  { %v392_v13 = vpop.f32.mrb[2].mxu0  ;;  %v400_v14 = vpop.f32.mrb[2].mxu1 }
  0xdc   :  { %v339_v15 = vpack.c.bf16 %v392_v13, %v391_v9  ;;  %v359_v16 = vpack.c.bf16 %v400_v14, %v399_v10  ;;  %v138_v17 = vpop.f32.mrb[3].mxu0  ;;  %v170_v18 = vpop.f32.mrb[3].mxu1 }
  0xdd   :  { %v334_v19 = vpack.c.bf16 %v138_v17, %v135_v11  ;;  %v354_v20 = vpack.c.bf16 %v170_v18, %v167_v12 }
  0xde   :  { %371 = vst [vmem:[%s492_s2 + $0x8] sm:$0xff] %v339_v15   ;;  %375 = vst [vmem:[%s492_s2 + $0x28] sm:$0xff] %v359_v16  }
  0xdf   :  { %335 = vst [vmem:[%s492_s2] sm:$0xff] %v334_v19   ;;  %374 = vst [vmem:[%s492_s2 + $0x20] sm:$0xff] %v354_v20  }
  0xe1   :  { %v395_v21 = vpop.f32.mrb[4].mxu0  ;;  %v403_v22 = vpop.f32.mrb[4].mxu1 }
  0xe2   :  { %v151_v23 = vpop.f32.mrb[5].mxu0  ;;  %v183_v24 = vpop.f32.mrb[5].mxu1 }
  0xe3   :  { %v396_v25 = vpop.f32.mrb[6].mxu0  ;;  %v404_v26 = vpop.f32.mrb[6].mxu1 }
  0xe4   :  { %v349_v27 = vpack.c.bf16 %v396_v25, %v395_v21  ;;  %v369_v28 = vpack.c.bf16 %v404_v26, %v403_v22  ;;  %v154_v29 = vpop.f32.mrb[7].mxu0  ;;  %v186_v30 = vpop.f32.mrb[7].mxu1 }
  0xe5   :  { %v344_v31 = vpack.c.bf16 %v154_v29, %v151_v23  ;;  %v364_v32 = vpack.c.bf16 %v186_v30, %v183_v24 }
  0xe6   :  { %373 = vst [vmem:[%s492_s2 + $0x18] sm:$0xff] %v349_v27   ;;  %377 = vst [vmem:[%s492_s2 + $0x38] sm:$0xff] %v369_v28  }
  0xe7   :  { %372 = vst [vmem:[%s492_s2 + $0x10] sm:$0xff] %v344_v31   ;;  %376 = vst [vmem:[%s492_s2 + $0x30] sm:$0xff] %v364_v32  }

// kernel: gcn_forward.3
= control target key start
LH: loop header
LB: loop body
LE: loop exit
PB: predicated region body
PF: predicated region fallthrough
CT: control target
= control target key end

     0   :  { %s555_s1 = inlined_call_operand.vmem [shape: bf16[128,128], index: 1, kind: input, shape index: {}]   ;;  %s556_s0 = inlined_call_operand.vmem [shape: bf16[128,128], index: 0, kind: input, shape index: {}]   ;;  %s557_s2 = inlined_call_operand.vmem [shape: f32[1,128], index: 2, kind: input, shape index: {}]   ;;  %s558_s3 = inlined_call_operand.vmem [shape: f32[128,128], index: 3, kind: output, shape index: {}]  }
   0x1   :  { %v420_v0 = vld [vmem:[%s555_s1] sm:$0xff]   ;;  %v421_v1 = vld [vmem:[%s555_s1 + $0x8] sm:$0xff]   ;;  %v422_v2 = vld [vmem:[%s555_s1 + $0x10] sm:$0xff]  }
   0x2   :  { %372 = vmatprep.subr.bf16.mxu0 %v420_v0  ;;  %404 = vmatprep.subr.bf16.mxu1 %v420_v0  ;;  %v423_v3 = vld [vmem:[%s555_s1 + $0x18] sm:$0xff]   ;;  %v428_v4 = vld [vmem:[%s556_s0] sm:$0xff]   ;;  %v425_v7 = vld [vmem:[%s555_s1 + $0x28] sm:$0xff]  }
   0x3   :  { %373 = vmatpush3.bf16.msra.mxu0 %v420_v0  ;;  %412 = vmatpush3.bf16.msra.mxu1 %v420_v0  ;;  %v429_v5 = vld [vmem:[%s556_s0 + $0x20] sm:$0xff]   ;;  %v426_v8 = vld [vmem:[%s555_s1 + $0x30] sm:$0xff]   ;;  %v427_v9 = vld [vmem:[%s555_s1 + $0x38] sm:$0xff]  }
   0x4   :  { %374 = vmatprep.subr.bf16.mxu0 %v421_v1  ;;  %405 = vmatprep.subr.bf16.mxu1 %v421_v1  ;;  %v424_v6 = vld [vmem:[%s555_s1 + $0x20] sm:$0xff]   ;;  %v430_v10 = vld [vmem:[%s556_s0 + $0x8] sm:$0xff]   ;;  %v432_v12 = vld [vmem:[%s556_s0 + $0x10] sm:$0xff]  }
   0x5   :  { %388 = vmatprep.mubr.bf16.mxu0 %v428_v4  ;;  %396 = vmatprep.mubr.bf16.mxu1 %v429_v5  ;;  %v431_v11 = vld [vmem:[%s556_s0 + $0x28] sm:$0xff]   ;;  %v433_v13 = vld [vmem:[%s556_s0 + $0x30] sm:$0xff]   ;;  %v434_v14 = vld [vmem:[%s556_s0 + $0x18] sm:$0xff]  }
   0x6   :  { %v435_v15 = vld [vmem:[%s556_s0 + $0x38] sm:$0xff]   ;;  %v355_v16 = vld [vmem:[%s557_s2] ss:$0 sm:$0xff] }
   0x7   :  { %375 = vmatpush3.bf16.msra.mxu0 %v421_v1  ;;  %413 = vmatpush3.bf16.msra.mxu1 %v421_v1 }
   0x8   :  { %376 = vmatprep.subr.bf16.mxu0 %v422_v2  ;;  %406 = vmatprep.subr.bf16.mxu1 %v422_v2 }
   0xb   :  { %377 = vmatpush3.bf16.msra.mxu0 %v422_v2  ;;  %414 = vmatpush3.bf16.msra.mxu1 %v422_v2 }
   0xc   :  { %378 = vmatprep.subr.bf16.mxu0 %v423_v3  ;;  %407 = vmatprep.subr.bf16.mxu1 %v423_v3 }
   0xf   :  { %379 = vmatpush3.bf16.msra.mxu0 %v423_v3  ;;  %415 = vmatpush3.bf16.msra.mxu1 %v423_v3 }
  0x10   :  { %380 = vmatprep.subr.bf16.mxu0 %v424_v6  ;;  %408 = vmatprep.subr.bf16.mxu1 %v424_v6 }
  0x13   :  { %381 = vmatpush3.bf16.msra.mxu0 %v424_v6  ;;  %416 = vmatpush3.bf16.msra.mxu1 %v424_v6 }
  0x14   :  { %382 = vmatprep.subr.bf16.mxu0 %v425_v7  ;;  %409 = vmatprep.subr.bf16.mxu1 %v425_v7 }
  0x17   :  { %383 = vmatpush3.bf16.msra.mxu0 %v425_v7  ;;  %417 = vmatpush3.bf16.msra.mxu1 %v425_v7 }
  0x18   :  { %384 = vmatprep.subr.bf16.mxu0 %v426_v8  ;;  %410 = vmatprep.subr.bf16.mxu1 %v426_v8 }
  0x1b   :  { %385 = vmatpush3.bf16.msra.mxu0 %v426_v8  ;;  %418 = vmatpush3.bf16.msra.mxu1 %v426_v8 }
  0x1c   :  { %386 = vmatprep.subr.bf16.mxu0 %v427_v9  ;;  %411 = vmatprep.subr.bf16.mxu1 %v427_v9 }
  0x1f   :  { %387 = vmatpush3.bf16.msra.mxu0 %v427_v9  ;;  %419 = vmatpush3.bf16.msra.mxu1 %v427_v9 }
  0x22   :  { %389 = vmatmul.mubr.bf16.vlgmr.msra.gmra.mrb[0].mxu0 %v430_v10  ;;  %397 = vmatmul.mubr.bf16.vlgmr.msra.gmra.mrb[0].mxu1 %v431_v11 }
  0x23   :  { %392 = vmatprep.mubr.bf16.mxu0 %v432_v12  ;;  %400 = vmatprep.mubr.bf16.mxu1 %v433_v13 }
  0x2a   :  { %393 = vmatmul.mubr.bf16.gmra.mrb[4].mxu0 %v434_v14  ;;  %401 = vmatmul.mubr.bf16.gmra.mrb[4].mxu1 %v435_v15 }
  0xf5   :  { %v390_v17 = vpop.f32.mrb[0].mxu0  ;;  %v398_v18 = vpop.f32.mrb[0].mxu1 }
  0xf6   :  { %v253_v19 = vadd.f32 %v390_v17, %v355_v16  ;;  %v261_v20 = vadd.f32 %v398_v18, %v355_v16  ;;  %v177_v21 = vpop.f32.mrb[1].mxu0  ;;  %v209_v22 = vpop.f32.mrb[1].mxu1 }
  0xf7   :  { %v251_v23 = vadd.f32 %v355_v16, %v177_v21  ;;  %v259_v24 = vadd.f32 %v355_v16, %v209_v22  ;;  %v391_v25 = vpop.f32.mrb[2].mxu0  ;;  %v399_v26 = vpop.f32.mrb[2].mxu1 }
  0xf8   :  { %269 = vst [vmem:[%s558_s3 + $0x10] sm:$0xff] %v253_v19  ;;  %277 = vst [vmem:[%s558_s3 + $0x50] sm:$0xff] %v261_v20  ;;  %v254_v27 = vadd.f32 %v391_v25, %v355_v16  ;;  %v262_v28 = vadd.f32 %v399_v26, %v355_v16  ;;  %v180_v29 = vpop.f32.mrb[3].mxu0  ;;  %v212_v30 = vpop.f32.mrb[3].mxu1 }
  0xf9   :  { %267 = vst [vmem:[%s558_s3] sm:$0xff] %v251_v23  ;;  %275 = vst [vmem:[%s558_s3 + $0x40] sm:$0xff] %v259_v24  ;;  %v252_v31 = vadd.f32 %v355_v16, %v180_v29  ;;  %v260_v32 = vadd.f32 %v355_v16, %v212_v30 }
  0xfa   :  { %270 = vst [vmem:[%s558_s3 + $0x18] sm:$0xff] %v254_v27  ;;  %278 = vst [vmem:[%s558_s3 + $0x58] sm:$0xff] %v262_v28 }
  0xfb   :  { %268 = vst [vmem:[%s558_s3 + $0x8] sm:$0xff] %v252_v31  ;;  %276 = vst [vmem:[%s558_s3 + $0x48] sm:$0xff] %v260_v32 }
  0xfd   :  { %v394_v33 = vpop.f32.mrb[4].mxu0  ;;  %v402_v34 = vpop.f32.mrb[4].mxu1 }
  0xfe   :  { %v257_v35 = vadd.f32 %v394_v33, %v355_v16  ;;  %v265_v36 = vadd.f32 %v402_v34, %v355_v16  ;;  %v193_v37 = vpop.f32.mrb[5].mxu0  ;;  %v225_v38 = vpop.f32.mrb[5].mxu1 }
  0xff   :  { %v255_v39 = vadd.f32 %v355_v16, %v193_v37  ;;  %v263_v40 = vadd.f32 %v355_v16, %v225_v38  ;;  %v395_v41 = vpop.f32.mrb[6].mxu0  ;;  %v403_v42 = vpop.f32.mrb[6].mxu1 }
 0x100   :  { %273 = vst [vmem:[%s558_s3 + $0x30] sm:$0xff] %v257_v35  ;;  %281 = vst [vmem:[%s558_s3 + $0x70] sm:$0xff] %v265_v36  ;;  %v258_v43 = vadd.f32 %v395_v41, %v355_v16  ;;  %v266_v44 = vadd.f32 %v403_v42, %v355_v16  ;;  %v196_v45 = vpop.f32.mrb[7].mxu0  ;;  %v228_v46 = vpop.f32.mrb[7].mxu1 }
 0x101   :  { %271 = vst [vmem:[%s558_s3 + $0x20] sm:$0xff] %v255_v39  ;;  %279 = vst [vmem:[%s558_s3 + $0x60] sm:$0xff] %v263_v40  ;;  %v256_v47 = vadd.f32 %v355_v16, %v196_v45  ;;  %v264_v48 = vadd.f32 %v355_v16, %v228_v46 }
 0x102   :  { %274 = vst [vmem:[%s558_s3 + $0x38] sm:$0xff] %v258_v43  ;;  %282 = vst [vmem:[%s558_s3 + $0x78] sm:$0xff] %v266_v44 }
 0x103   :  { %272 = vst [vmem:[%s558_s3 + $0x28] sm:$0xff] %v256_v47  ;;  %280 = vst [vmem:[%s558_s3 + $0x68] sm:$0xff] %v264_v48 }

</bundles_post_ra>
